<compile_context>
chip_gen: v7x
topology: tpu7x:2x2x1
jax: 0.10.0
libtpu: 0.0.40
codegen_flags: <defaults>
</compile_context>

<pallas_src>
import functools
import math

import jax
import jax.numpy as jnp
from jax.experimental import pallas as pl
from jax.experimental.pallas import tpu as pltpu

EPS = 1e-5

# Sized for the smallest-VMEM generation (v7x: 64 MiB physical per TC).
VMEM_LIMIT_BYTES = 32 * 1024 * 1024
TILE_BUDGET_BYTES = 20 * 1024 * 1024
MAX_TILE_ROWS = 512        # safe on v5e, no measurable loss on v6e/v7x
MIN_GRID_STEPS = 4         # pipeline overlap + both v7x TensorCores busy


def _sublane_multiple(dtype):
    """Native packed sublane multiple: 8 (f32), 16 (bf16/f16), 32 (int8/fp8)."""
    itemsize = jnp.dtype(dtype).itemsize
    return max(8, 32 // max(itemsize, 1))


def _choose_tile_rows(rows, padded_dim, dtype):
    """Largest row tile whose full VMEM footprint fits TILE_BUDGET_BYTES."""
    itemsize = jnp.dtype(dtype).itemsize
    sub = _sublane_multiple(dtype)
    # Per-row bytes: 2x double-buffered input + 2x double-buffered output tiles
    # (itemsize each) plus ~3 single-instance full-tile f32 temporaries that the
    # kernel body keeps live (they do not fit in 64x4KiB vregs).
    per_row = (4 * itemsize + 3 * 4) * padded_dim
    t = TILE_BUDGET_BYTES // max(per_row, 1)
    t = min(int(t), MAX_TILE_ROWS)
    # Never a single full-extent block: keep >= MIN_GRID_STEPS grid steps so
    # DMA/compute/writeback overlap and the parallel axis can shard across TCs.
    t = min(t, pl.cdiv(rows, MIN_GRID_STEPS))
    t = max((t // sub) * sub, sub)
    return t


def layernorm_kernel(x_ref, scale_ref, shift_ref, o_ref, *, real_dim):
    # x_ref: (tile_rows, padded_dim) block in VMEM; padded_dim % 128 == 0.
    x_in = x_ref[...]
    xf = x_in.astype(jnp.float32)
    padded_dim = xf.shape[-1]
    inv_n = 1.0 / real_dim

    if padded_dim != real_dim:
        # Feature axis was padded to stay lane-dense: mask padded lanes out of
        # the reductions (real_dim is a Python int -> static specialization).
        lane = jax.lax.broadcasted_iota(jnp.int32, (1, padded_dim), 1)
        mask = lane < real_dim
        xs = jnp.where(mask, xf, 0.0)
    else:
        mask = None
        xs = xf

    # Two-pass mean/variance in f32 (tile is VMEM-resident, so no extra HBM
    # traffic); matches torch.var(unbiased=False) without cancellation issues.
    mean = jnp.sum(xs, axis=-1, keepdims=True) * inv_n
    centered = xf - mean
    c = jnp.where(mask, centered, 0.0) if mask is not None else centered
    var = jnp.sum(c * c, axis=-1, keepdims=True) * inv_n
    inv_std = jax.lax.rsqrt(var + EPS)

    low_prec = x_in.dtype in (jnp.dtype(jnp.bfloat16), jnp.dtype(jnp.float16))
    if low_prec:
        # Keep the statistics in f32 but do the final elementwise normalize in
        # the packed input dtype: halves VALU work per vreg on v6e/v7x.
        dt = x_in.dtype
        norm = (x_in - mean.astype(dt)) * inv_std.astype(dt)
        out = scale_ref[...].astype(dt) * norm + shift_ref[...].astype(dt)
    else:
        scale = scale_ref[...].astype(jnp.float32)
        shift = shift_ref[...].astype(jnp.float32)
        out = scale * (centered * inv_std) + shift
    o_ref[...] = out.astype(o_ref.dtype)


def layer_norm(x, scale, shift, *, tile_rows=None):
    """x: (..., emb_dim); scale, shift: (emb_dim,).  PyTorch LayerNorm forward."""
    orig_shape = x.shape
    emb_dim = orig_shape[-1]
    rows = math.prod(orig_shape[:-1]) if len(orig_shape) > 1 else 1

    # Lane-dense feature axis: pad once here (and slice after) rather than
    # letting every tile store through masked vst.msk.
    padded_dim = ((emb_dim + 127) // 128) * 128

    x2 = x.reshape(rows, emb_dim)
    scale2 = scale.reshape(1, emb_dim)
    shift2 = shift.reshape(1, emb_dim)
    if padded_dim != emb_dim:
        pad = padded_dim - emb_dim
        x2 = jnp.pad(x2, ((0, 0), (0, pad)))
        scale2 = jnp.pad(scale2, ((0, 0), (0, pad)))
        shift2 = jnp.pad(shift2, ((0, 0), (0, pad)))

    if tile_rows is None:
        tile_rows = _choose_tile_rows(rows, padded_dim, x2.dtype)

    # Ragged last block is fine: reduction is per-row; OOB rows are read as
    # garbage but never contaminate valid rows and are never stored back.
    grid = (pl.cdiv(rows, tile_rows),)

    kernel = functools.partial(layernorm_kernel, real_dim=emb_dim)

    out = pl.pallas_call(
        kernel,
        out_shape=jax.ShapeDtypeStruct((rows, padded_dim), x.dtype),
        grid_spec=pltpu.PrefetchScalarGridSpec(
            num_scalar_prefetch=0,
            grid=grid,
            in_specs=[
                pl.BlockSpec((tile_rows, padded_dim), lambda i: (i, 0)),
                pl.BlockSpec((1, padded_dim), lambda i: (0, 0)),
                pl.BlockSpec((1, padded_dim), lambda i: (0, 0)),
            ],
            out_specs=pl.BlockSpec((tile_rows, padded_dim), lambda i: (i, 0)),
        ),
        compiler_params=pltpu.CompilerParams(
            dimension_semantics=("parallel",),
            vmem_limit_bytes=VMEM_LIMIT_BYTES,
        ),
    )(x2, scale2, shift2)

    if padded_dim != emb_dim:
        out = out[:, :emb_dim]
    return out.reshape(orig_shape)


def _reference(x, scale, shift):
    xf = x.astype(jnp.float32)
    mean = xf.mean(axis=-1, keepdims=True)
    var = ((xf - mean) ** 2).mean(axis=-1, keepdims=True)
    return scale.astype(jnp.float32) * (xf - mean) / jnp.sqrt(var + EPS) + shift.astype(
        jnp.float32
    )


if __name__ == "__main__":
    key = jax.random.PRNGKey(0)
    k1, k2, k3 = jax.random.split(key, 3)

    # --- Case 1: main shape (batch=2, seq=8, emb_dim=128), f32, 2 grid steps.
    batch, seq, emb_dim = 2, 8, 128
    x = jax.random.normal(k1, (batch, seq, emb_dim), dtype=jnp.float32)
    scale = jnp.ones((emb_dim,), dtype=jnp.float32)
    shift = jnp.zeros((emb_dim,), dtype=jnp.float32)
    out = jax.block_until_ready(layer_norm(x, scale, shift))
    ref = _reference(x, scale, shift)
    assert jnp.allclose(out, ref, atol=1e-5, rtol=1e-5), "case1 mismatch"

    # --- Case 2: ragged last row-block (rows=24, tile_rows=16 -> grid=2), f32,
    # with non-trivial scale/shift.
    x2 = jax.random.normal(k2, (3, 8, emb_dim), dtype=jnp.float32) * 3.0 + 2.0
    scale2 = 0.5 + jax.random.uniform(k2, (emb_dim,), dtype=jnp.float32)
    shift2 = jax.random.normal(k3, (emb_dim,), dtype=jnp.float32)
    out2 = jax.block_until_ready(layer_norm(x2, scale2, shift2, tile_rows=16))
    ref2 = _reference(x2, scale2, shift2)
    assert jnp.allclose(out2, ref2, atol=1e-4, rtol=1e-4), "case2 mismatch"

    # --- Case 3: bf16 input with emb_dim not a multiple of 128 (padded path).
    emb3 = 96
    x3 = jax.random.normal(k3, (2, 8, emb3), dtype=jnp.bfloat16)
    scale3 = jnp.ones((emb3,), dtype=jnp.float32)
    shift3 = jnp.zeros((emb3,), dtype=jnp.float32)
    out3 = jax.block_until_ready(layer_norm(x3, scale3, shift3))
    ref3 = _reference(x3, scale3, shift3)
    assert jnp.allclose(out3.astype(jnp.float32), ref3, atol=5e-2, rtol=5e-2), (
        "case3 mismatch"
    )

    print("KERNEL_OK")
</pallas_src>

<mosaic_0001>
module attributes {stable_mosaic.version = 11 : i64} {
  func.func @layernorm_kernel(%arg0: i32, %arg1: memref<8x128xf32, #tpu.memory_space<vmem>>, %arg2: memref<1x128xf32, #tpu.memory_space<vmem>>, %arg3: memref<1x128xf32, #tpu.memory_space<vmem>>, %arg4: memref<8x128xf32, #tpu.memory_space<vmem>>) attributes {dimension_semantics = [#tpu.dimension_semantics<parallel>], iteration_bounds = array<i64: 2>, scalar_prefetch = 0 : i64, scratch_operands = 0 : i64, tpu.core_type = #tpu.core_type<tc>, window_params = [{transform_indices = @transform_0, window_bounds = array<i64: 8, 128>}, {pipeline_mode = #tpu.pipeline_mode<synchronous>, transform_indices = @transform_1, window_bounds = array<i64: 1, 128>}, {pipeline_mode = #tpu.pipeline_mode<synchronous>, transform_indices = @transform_2, window_bounds = array<i64: 1, 128>}, {transform_indices = @transform_3, window_bounds = array<i64: 8, 128>}]} {
    %c0 = arith.constant 0 : index
    %c0_0 = arith.constant 0 : index
    %0 = vector.load %arg1[%c0, %c0_0] : memref<8x128xf32, #tpu.memory_space<vmem>>, vector<8x128xf32>
    %cst = arith.constant dense<0.000000e+00> : vector<8xf32>
    %1 = vector.multi_reduction <add>, %0, %cst [1] : vector<8x128xf32> to vector<8xf32>
    %2 = vector.shape_cast %1 : vector<8xf32> to vector<8x1xf32>
    %cst_1 = arith.constant 7.812500e-03 : f32
    %3 = vector.broadcast %cst_1 : f32 to vector<8x1xf32>
    %4 = arith.mulf %2, %3 : vector<8x1xf32>
    %5 = vector.broadcast %4 : vector<8x1xf32> to vector<8x128xf32>
    %6 = arith.subf %0, %5 : vector<8x128xf32>
    %7 = arith.mulf %6, %6 : vector<8x128xf32>
    %cst_2 = arith.constant dense<0.000000e+00> : vector<8xf32>
    %8 = vector.multi_reduction <add>, %7, %cst_2 [1] : vector<8x128xf32> to vector<8xf32>
    %9 = vector.shape_cast %8 : vector<8xf32> to vector<8x1xf32>
    %cst_3 = arith.constant 7.812500e-03 : f32
    %10 = vector.broadcast %cst_3 : f32 to vector<8x1xf32>
    %11 = arith.mulf %9, %10 : vector<8x1xf32>
    %cst_4 = arith.constant 9.99999974E-6 : f32
    %12 = vector.broadcast %cst_4 : f32 to vector<8x1xf32>
    %13 = arith.addf %11, %12 : vector<8x1xf32>
    %14 = math.rsqrt %13 : vector<8x1xf32>
    %c0_5 = arith.constant 0 : index
    %c0_6 = arith.constant 0 : index
    %15 = vector.load %arg2[%c0_5, %c0_6] : memref<1x128xf32, #tpu.memory_space<vmem>>, vector<1x128xf32>
    %c0_7 = arith.constant 0 : index
    %c0_8 = arith.constant 0 : index
    %16 = vector.load %arg3[%c0_7, %c0_8] : memref<1x128xf32, #tpu.memory_space<vmem>>, vector<1x128xf32>
    %17 = vector.broadcast %14 : vector<8x1xf32> to vector<8x128xf32>
    %18 = arith.mulf %6, %17 : vector<8x128xf32>
    %19 = vector.broadcast %15 : vector<1x128xf32> to vector<8x128xf32>
    %20 = arith.mulf %19, %18 : vector<8x128xf32>
    %21 = vector.broadcast %16 : vector<1x128xf32> to vector<8x128xf32>
    %22 = arith.addf %20, %21 : vector<8x128xf32>
    %c0_9 = arith.constant 0 : index
    %c0_10 = arith.constant 0 : index
    %23 = vector.load %arg4[%c0_9, %c0_10] : memref<8x128xf32, #tpu.memory_space<vmem>>, vector<8x128xf32>
    tpu.vector_store %arg4[%c0_9, %c0_10], %22 {strides = array<i32>} : memref<8x128xf32, #tpu.memory_space<vmem>>, vector<8x128xf32>,
    return
  }
  func.func @transform_0(%arg0: i32) -> (i32, i32) {
    %c0_i32 = arith.constant 0 : i32
    %c0_i32_0 = arith.constant 0 : i32
    return %arg0, %c0_i32 : i32, i32
  }
  func.func @transform_1(%arg0: i32) -> (i32, i32) {
    %c0_i32 = arith.constant 0 : i32
    %c0_i32_0 = arith.constant 0 : i32
    %c0_i32_1 = arith.constant 0 : i32
    return %c0_i32, %c0_i32_0 : i32, i32
  }
  func.func @transform_2(%arg0: i32) -> (i32, i32) {
    %c0_i32 = arith.constant 0 : i32
    %c0_i32_0 = arith.constant 0 : i32
    %c0_i32_1 = arith.constant 0 : i32
    return %c0_i32, %c0_i32_0 : i32, i32
  }
  func.func @transform_3(%arg0: i32) -> (i32, i32) {
    %c0_i32 = arith.constant 0 : i32
    %c0_i32_0 = arith.constant 0 : i32
    return %arg0, %c0_i32 : i32, i32
  }
}

</mosaic_0001>

<bundles_post_ra>
// kernel: tpu_custom_call.1
= control target key start
LH: loop header
LB: loop body
LE: loop exit
PB: predicated region body
PF: predicated region fallthrough
CT: control target
= control target key end

     0   :  { %8 = vsyncpa [#allocation3], 0  ;;  %s648_s0 = inlined_call_operand.hbm [shape: f32[16,128], index: 0, kind: input, shape index: {}]   ;;  %s649_s1 = inlined_call_operand.vmem [shape: f32[1,128], index: 1, kind: input, shape index: {}]   ;;  %s650_s2 = inlined_call_operand.vmem [shape: f32[1,128], index: 2, kind: input, shape index: {}]   ;;  %s651_s3 = inlined_call_operand.hbm [shape: f32[16,128], index: 3, kind: output, shape index: {}]  }
   0x1   :  { %10 = vsyncpa [#allocation3 + $0x1], 0 }
   0x2   :  { %11 = vsyncpa [#allocation4], 0 }
   0x3   :  { %13 = vsyncpa [#allocation4 + $0x1], 0  ;;  %s481_s12 = smov 0   ;;  %s483_s13 = smov 0  }
   0x4   :  { %s485_s14 = smov 0   ;;  %s487_s15 = smov 0  }
   0x5 LB: > { %s502_s16 = sadd.s32 4294967295, %s457_s15   ;;  %s299_s17 = sadd.s32 4294967294, %s457_s15   ;;  %s457_s15 = sphi %s487_s15, %s666_s15   ;;  %s453_s14 = sphi %s485_s14, %s665_s14   ;;  %s449_s13 = sphi %s483_s13, %s664_s13   ;;  %s445_s12 = sphi %s481_s12, %s663_s12  }
   0x6   : > { %s506_s18 = sadd.s32 1, %s457_s15   ;;  %s26_s19 = sadd.s32 1, %s453_s14 }
   0x7   : > { %s23_s20 = ssub.s32 %s457_s15, %s506_s18  ;;  %p33_p0 = scmp.ne.s32.totalorder %s453_s14, %s449_s13 }
   0x8   : > { %p24_p1 = scmp.eq.s32.totalorder %s23_s20, 0  ;;  %p34_p2 = scmp.eq.s32.totalorder %s457_s15, 0 }
   0x9   : > { %p39_p3 = scmp.ne.s32.totalorder %s449_s13, %s445_s12  ;;  %p40_p4 = scmp.eq.s32.totalorder %s502_s16, 0 }
   0xa   : > { %s518_s21 = scalar_select %p24_p1, %s453_s14, %s26_s19  }
   0xb   : > { %p520_p5 = por %p34_p2, %p33_p0  ;;  %p524_p6 = por %p40_p4, %p39_p3 }
   0xc   : > { %p105_p7 = scmp.eq.s32.totalorder %s502_s16, 1  ;;  %p111_p8 = scmp.eq.s32.totalorder %s299_s17, 1 }
   0xd   : > { %p325_p10 = scmp.lt.s32.totalorder %s457_s15, 2  ;;  %s137_s26 = sand.u32 1, %s453_s14  }
   0xe   : > { %p531_p11 = por %p105_p7, %p33_p0  ;;  %p535_p12 = por %p111_p8, %p39_p3 }
   0xf   : > { %s303_s27 = sshll.u32 %s457_s15, 7  ;;  %s302_s28 = sshll.u32 %s137_s26, 3 }
  0x10   : > { %s655_s24 = scalar_select %p531_p11, 1, 0 }
  0x11   : > { %s656_s25 = scalar_select %p535_p12, 1, 0 }
  0x12   : > { %s544_s4 = scalar_lea.hbm %s648_s0, %s303_s27  ;;  %s141_s5 = scalar_lea.vmem [#allocation2], %s302_s28 }
  0x13   : > { %s148_s6 = sshll.u32 %s141_s5, 4  ;;  %p548_p13 = pnand %p325_p10, %p520_p5  ;;  %s552_s6 = int_to_ptr.vmem [resolvable:$true] %s148_s6 }
  0x14   : > { %s138_s8 = scalar_lea.sflag [#allocation3], %s137_s26  ;;  %s361_s9 = scalar_lea.hbm %s544_s4, 128 }
  0x15   : > { %p362_p2 = scmp.ne.s32.totalorder %s544_s4, %s361_s9  ;;  %p363_p3 = pneg %p548_p13 }
  0x16   : > { %s366_s17 = scalar_lea.hbm %s648_s0, 256  ;;  %p367_p5 = scmp.lt.u32.totalorder %s544_s4, %s648_s0 }
  0x17   : > { %p364_p4 = pnand %p363_p3, %p362_p2  ;;  %p368_p8 = scmp.lt.u32.totalorder %s366_s17, %s361_s9 }
  0x18   : > { %p370_p9 = scmp.lt.u32.totalorder %s361_s9, %s544_s4 }
  0x19   : > { %p365_p7 = pneg %p364_p4  ;;  %p369_p10 = por %p368_p8, %p367_p5 }
  0x1b   : > { %p371_p0 = por %p370_p9, %p369_p10 }
  0x1d   : > { %p372_p1 = pnand %p371_p0, %p365_p7 }
  0x1f   : > { %375 = shalt.err (!%p372_p1)
}
  0x20   : > { %s376_s22 = scalar_lea.vmem %s552_s6, 128  ;;  %s459_s26 = smov [#allocation2]  }
  0x21   : > { %p377_p2 = scmp.ne.s32.totalorder %s552_s6, %s376_s22  ;;  %s381_s27 = sshll.u32 %s459_s26, 4  ;;  %s382_s27 = int_to_ptr.vmem [resolvable:$false] %s381_s27 }
  0x22   : > { %s383_s28 = scalar_lea.vmem %s382_s27, 256  ;;  %p384_p11 = scmp.lt.s32.totalorder %s552_s6, %s382_s27 }
  0x23   : > { %p379_p4 = pnand %p377_p2, %p363_p3  ;;  %p385_p5 = scmp.lt.s32.totalorder %s383_s28, %s376_s22 }
  0x25   : > { %p380_p12 = pneg %p379_p4  ;;  %p386_p8 = por %p385_p5, %p384_p11 }
  0x27   : > { %p387_p9 = pnand %p386_p8, %p380_p12 }
  0x29   : > { %390 = shalt.err (!%p387_p9)
}
  0x2a   : > { %320 = dma.hbm_to_vmem [thread:$0]  (!%p548_p13), %s544_s4, 128, %s552_s6, %s138_s8  }
  0x2b   : > { %p658_p0 = scmp.lt.s32.totalorder %s457_s15, 3  ;;  %p659_p1 = scmp.ge.s32.totalorder %s457_s15, 1 }
  0x2d   : > { %p154_p3 = pnand %p659_p1, %p658_p0 }
  0x2e   : > { %s586_s29 = sand.u32 (!%p154_p3), 1, %s449_s13  }
  0x2f   : > { %157 = sbr.rel (%p154_p3) target bundleno = 381 (0x17d), region = 32  ;;  %s305_s30 = sshll.u32 (!%p154_p3), %s586_s29, 3 }
  0x30   : > { %s160_s5 = scalar_lea.sflag (!%p154_p3), [#allocation3], %s586_s29  ;;  %s163_s9 = scalar_lea.vmem (!%p154_p3), [#allocation2], %s305_s30 }
  0x36   : > { %436 = dma.done.wait (%p524_p6), %s160_s5, 128  }
  0x37   : > { %438 = vsyncadd (%p524_p6), %s160_s5, 4294967168  ;;  %v186_v0 = vld [vmem:[%s163_s9] sm:$0xff]  ;;  %s310_s8 = sshll.u32 %s502_s16, 7  ;;  %s185_s10 = scalar_lea.vmem [#allocation5], %s305_s30 }
  0x38   : > { %187 = vadd.xlane.f32.xlu0 %v186_v0  ;;  %v307_v9 = vld [vmem:[%s649_s1] ss:$0 sm:$0xff]  ;;  %s229_s11 = sshll.u32 %s185_s10, 4  ;;  %s604_s20 = scalar_lea.hbm %s651_s3, %s310_s8  ;;  %s606_s11 = int_to_ptr.vmem [resolvable:$true] %s229_s11 }
  0x39   : > { %v308_v11 = vld [vmem:[%s650_s2] ss:$0 sm:$0xff]  ;;  %s216_s22 = scalar_lea.sflag [#allocation4], %s586_s29  ;;  %s391_s26 = scalar_lea.vmem %s606_s11, 128 }
  0x3a   : > { %p392_p6 = scmp.ne.s32.totalorder %s606_s11, %s391_s26  ;;  %p660_p11 = scmp.ne.s32.totalorder %s655_s24, 0 }
  0x3b   : > { %s460_s16 = smov [#allocation5]  }
  0x3c   : > { %p393_p12 = pnand %p392_p6, %p660_p11  ;;  %s395_s27 = sshll.u32 %s460_s16, 4  ;;  %s396_s27 = int_to_ptr.vmem [resolvable:$false] %s395_s27 }
  0x3d   : > { %s397_s28 = scalar_lea.vmem %s396_s27, 256  ;;  %p398_p7 = scmp.lt.s32.totalorder %s606_s11, %s396_s27 }
  0x3e   : > { %p394_p13 = pneg %p393_p12  ;;  %p399_p10 = scmp.lt.s32.totalorder %s397_s28, %s391_s26 }
  0x40   : > { %p400_p2 = por %p399_p10, %p398_p7 }
  0x42   : > { %p401_p4 = pnand %p400_p2, %p394_p13 }
  0xc5   : > { %v188_v1 = vpop.xlane.xlu0 %187 }
  0xc6   : > { %v189_v2 = vmul.f32 0.0078125, %v188_v1 }
  0xc8   : > { %v190_v3 = vsub.f32 %v186_v0, %v189_v2 }
  0xca   : > { %v191_v4 = vmul.f32 %v190_v3, %v190_v3 }
  0xcc   : > { %192 = vadd.xlane.f32.xlu0 %v191_v4 }
 0x159   : > { %v193_v5 = vpop.xlane.xlu0 %192 }
 0x15a   : > { %v194_v6 = vmul.f32 0.0078125, %v193_v5 }
 0x15c   : > { %v195_v7 = vadd.f32 1e-05, %v194_v6 }
 0x15e   : > { %359 = vrsqrt.f32 %v195_v7 }
 0x168   : > { %v360_v8 = vpop.eup %359 }
 0x169   : > { %v199_v10 = vmul.f32 %v360_v8, %v190_v3 }
 0x16b   : > { %v206_v12 = vmul.f32 %v307_v9, %v199_v10 }
 0x16d   : > { %v213_v13 = vadd.f32 %v308_v11, %v206_v12 }
 0x16f   : > { %214 = vst [vmem:[%s185_s10] sm:$0xff] %v213_v13 }
 0x170   : > { %404 = shalt.err (!%p401_p4)
}
 0x171   : > { %s405_s29 = scalar_lea.hbm %s604_s20, 128  ;;  %s409_s9 = scalar_lea.hbm %s651_s3, 256 }
 0x172   : > { %p406_p5 = scmp.ne.s32.totalorder %s604_s20, %s405_s29  ;;  %p410_p0 = scmp.lt.u32.totalorder %s604_s20, %s651_s3 }
 0x173   : > { %p411_p1 = scmp.lt.u32.totalorder %s409_s9, %s405_s29  ;;  %p413_p6 = scmp.lt.u32.totalorder %s405_s29, %s604_s20 }
 0x174   : > { %p407_p8 = pnand %p406_p5, %p660_p11 }
 0x175   : > { %p412_p3 = por %p411_p1, %p410_p0 }
 0x176   : > { %p408_p9 = pneg %p407_p8 }
 0x177   : > { %p414_p12 = por %p413_p6, %p412_p3 }
 0x179   : > { %p415_p13 = pnand %p414_p12, %p408_p9 }
 0x17b   : > { %418 = shalt.err (!%p415_p13)
}
 0x17c   : > { %315 = dma.vmem_to_hbm [thread:$0]  (%p660_p11), %s606_s11, 128, %s604_s20, %s216_s22  }
 0x17d PF: > { %s241_s23 = sand.u32 1, %s445_s12   ;;  %p661_p7 = scmp.ne.s32.totalorder %s656_s25, 0 }
 0x17e   : > { %p662_p10 = scmp.ge.s32.totalorder %s457_s15, 2  ;;  %s242_s7 = scalar_lea.sflag [#allocation4], %s241_s23 }
 0x180   : > { %p322_p2 = pnand %p662_p10, %p661_p7 }
 0x182   : > { %440 = dma.done.wait (!%p322_p2), %s242_s7, 128  }
 0x183   : > { %442 = vsyncadd (!%p322_p2), %s242_s7, 4294967168  ;;  %p16_p4 = scmp.ge.s32.totalorder %s506_s18, 4   ;;  %s663_s12 = smov %s449_s13 }
 0x184   : > { %s664_s13 = smov %s453_s14  ;;  %s665_s14 = smov %s518_s21 }
 0x185   : > { %s666_s15 = smov %s506_s18  ;;  %18 = sbr.rel (!%p16_p4) target bundleno = 5 (0x5), region = 77 }
 0x18c   :  { %247 = vsyncpa [#allocation3], 1 }
 0x18d   :  { %249 = vsyncpa [#allocation3 + $0x1], 1 }
 0x18e   :  { %250 = vsyncpa [#allocation4], 1 }
 0x18f   :  { %252 = vsyncpa [#allocation4 + $0x1], 1 }

</bundles_post_ra>
